<compile_context>
chip_gen: v5e
topology: v5e:2x2
jax: 0.10.0
libtpu: 0.0.40
codegen_flags: <defaults>
</compile_context>

<pallas_src>
import functools

import jax
import jax.numpy as jnp
from jax.experimental import pallas as pl
from jax.experimental.pallas import tpu as pltpu


def _round_up(x, m):
    return ((x + m - 1) // m) * m


def _pick_tile_b(b_pad, cap=128):
    """Largest multiple-of-8 divisor of b_pad, <= cap, preferring >= 2 blocks
    along the parallel batch axis (so v7x's second TensorCore gets work)."""
    cap = max(cap, 8)
    n_sub = b_pad // 8
    cands = [8 * d for d in range(1, n_sub + 1) if n_sub % d == 0 and 8 * d <= cap]
    if not cands:
        cands = [8]                       # 8 always divides b_pad
    two_block = [c for c in cands if b_pad // c >= 2]
    return max(two_block) if two_block else max(cands)


# ---------------------------------------------------------------------------
# Fused kernel:  input projection  ->  serial CTRNN recurrence  ->  fc readout
#   grid = (batch_blocks [parallel], time_blocks [arbitrary, innermost])
# ---------------------------------------------------------------------------
def _fused_rnn_kernel(x_ref, noise_ref, w_in_ref, w_h_ref, w_fc_ref,
                      b_comb_ref, b_fc_ref, out_ref, act_ref, h_ref, *,
                      alpha, oneminusalpha, tile_t):
    # Hidden state persists across time blocks; reset at the start of each
    # batch block's time scan (time is the innermost, "arbitrary" axis).
    @pl.when(pl.program_id(1) == 0)
    def _():
        h_ref[...] = jnp.zeros_like(h_ref)

    tt, tb, i_sz = x_ref.shape
    h_pad = act_ref.shape[-1]

    # --- 1) fused time-parallel input projection --------------------------
    # One big (tt*tb, I) x (I, H) MXU pass; result is staged in the `act`
    # output block (same shape, VMEM) which doubles as pre_in scratch.
    x2d = x_ref[...].reshape(tt * tb, i_sz)
    pre2d = (jnp.dot(x2d, w_in_ref[...], preferred_element_type=jnp.float32)
             + b_comb_ref[...])
    act_ref[...] = pre2d.reshape(tt, tb, h_pad) + noise_ref[...]

    # --- 2) serial recurrence: only the unavoidable h @ W_h^T dependency --
    # w_h_ref[...] is loaded inside the (unrolled) step so the full
    # (H_pad, H_pad) weight is never held live in vregs across the loop.
    # TODO(synk): stage W_h in the MXU once per time block with
    # pltpu.matmul_push_rhs / matmul_acc_lhs / matmul_pop; and K-block the
    # contraction over a grid axis for very large H (w_h must fit in VMEM).
    def step(i, h):
        pre = act_ref[i] + jnp.dot(h, w_h_ref[...],
                                   preferred_element_type=jnp.float32)
        relu = jnp.maximum(pre, 0.0)
        if oneminusalpha == 0.0:          # alpha == 1: trace-time special case
            h_new = relu
        else:
            h_new = h * oneminusalpha + relu * alpha
        act_ref[i] = h_new                # overwrite pre_in slot with activity
        return h_new

    h_ref[...] = jax.lax.fori_loop(0, tile_t, step, h_ref[...], unroll=True)

    # --- 3) fused time-parallel fc readout ---------------------------------
    act2d = act_ref[...].reshape(tt * tb, h_pad)
    out2d = (jnp.dot(act2d, w_fc_ref[...], preferred_element_type=jnp.float32)
             + b_fc_ref[...])
    out_ref[...] = out2d.reshape(tt, tb, -1)


def rnn_net_forward(x, noise, params, *, alpha, oneminusalpha,
                    tile_t=32, tile_b=None):
    """x: (T, B, I) f32, noise: (T, B, H) f32 (pre-sampled recurrent noise).

    params (PyTorch convention):
      w_in (H, I), b_in (H,), w_h (H, H), b_h (H,), w_fc (O, H), b_fc (O,)
    Returns (out (T, B, O), rnn_activity (T, B, H)).
    """
    T, B, I = x.shape
    H = params["w_in"].shape[0]
    O = params["w_fc"].shape[0]

    # ---- pad to vreg/MXU-friendly shapes (sublane=8, lane=128) -------------
    B_pad = _round_up(B, 8)
    H_pad = _round_up(H, 128)
    O_pad = _round_up(O, 128)
    TILE_T = min(tile_t, T)
    T_pad = _round_up(T, TILE_T)
    TILE_B = _pick_tile_b(B_pad, cap=tile_b if tile_b else 128)

    x_p = jnp.zeros((T_pad, B_pad, I), jnp.float32).at[:T, :B, :].set(x)
    noise_p = (jnp.zeros((T_pad, B_pad, H_pad), jnp.float32)
               .at[:T, :B, :H].set(noise))
    # TODO(synk): optionally generate the recurrent noise in-kernel
    # (pltpu.prng_seed + pltpu.stateful_normal) behind a flag to remove this
    # full (T,B,H) HBM stream; kept pre-sampled for RNG parity with torch.

    w_in_t = jnp.zeros((I, H_pad), jnp.float32).at[:, :H].set(params["w_in"].T)
    w_h_t = jnp.zeros((H_pad, H_pad), jnp.float32).at[:H, :H].set(params["w_h"].T)
    w_fc_t = jnp.zeros((H_pad, O_pad), jnp.float32).at[:H, :O].set(params["w_fc"].T)
    b_comb = (jnp.zeros((1, H_pad), jnp.float32)
              .at[0, :H].set(params["b_in"] + params["b_h"]))   # fold b_in + b_h
    b_fc = jnp.zeros((1, O_pad), jnp.float32).at[0, :O].set(params["b_fc"])

    # ---- explicit VMEM budget (default double-buffering on all blocks) ----
    def _b(*shape):
        n = 4
        for s in shape:
            n *= s
        return n

    vmem_bytes = (
        2 * _b(TILE_T, TILE_B, I)           # x
        + 2 * _b(TILE_T, TILE_B, H_pad)     # noise
        + 2 * _b(I, H_pad)                  # w_in
        + 2 * _b(H_pad, H_pad)              # w_h
        + 2 * _b(H_pad, O_pad)              # w_fc
        + 2 * _b(1, H_pad) + 2 * _b(1, O_pad)
        + 2 * _b(TILE_T, TILE_B, O_pad)     # out
        + 2 * _b(TILE_T, TILE_B, H_pad)     # act
        + _b(TILE_B, H_pad)                 # h scratch
    )
    # 2x headroom for lane padding / compiler scratch, floor 16 MiB.
    vmem_limit = int(min(max(2 * vmem_bytes, 16 << 20), 128 << 20))
    # TODO(synk): for very large H on v7x (64 MiB VMEM) put
    # pipeline_mode=pl.Buffered(1) on the constant-index weight specs to drop
    # their double buffer.

    rec_kernel = functools.partial(
        _fused_rnn_kernel, alpha=alpha, oneminusalpha=oneminusalpha,
        tile_t=TILE_T)

    const = lambda b, t: (0, 0)             # weights/biases: same block always
    out_p, act_p = pl.pallas_call(
        rec_kernel,
        out_shape=(jax.ShapeDtypeStruct((T_pad, B_pad, O_pad), jnp.float32),
                   jax.ShapeDtypeStruct((T_pad, B_pad, H_pad), jnp.float32)),
        grid_spec=pltpu.PrefetchScalarGridSpec(
            num_scalar_prefetch=0,
            grid=(B_pad // TILE_B, T_pad // TILE_T),
            in_specs=[
                pl.BlockSpec((TILE_T, TILE_B, I), lambda b, t: (t, b, 0)),
                pl.BlockSpec((TILE_T, TILE_B, H_pad), lambda b, t: (t, b, 0)),
                pl.BlockSpec((I, H_pad), const),
                pl.BlockSpec((H_pad, H_pad), const),
                pl.BlockSpec((H_pad, O_pad), const),
                pl.BlockSpec((1, H_pad), const),
                pl.BlockSpec((1, O_pad), const),
            ],
            out_specs=[
                pl.BlockSpec((TILE_T, TILE_B, O_pad), lambda b, t: (t, b, 0)),
                pl.BlockSpec((TILE_T, TILE_B, H_pad), lambda b, t: (t, b, 0)),
            ],
            scratch_shapes=[pltpu.VMEM((TILE_B, H_pad), jnp.float32)],
        ),
        compiler_params=pltpu.CompilerParams(
            dimension_semantics=("parallel", "arbitrary"),
            vmem_limit_bytes=vmem_limit),
    )(x_p, noise_p, w_in_t, w_h_t, w_fc_t, b_comb, b_fc)

    return out_p[:T, :B, :O], act_p[:T, :B, :H]


def init_params(key, input_size, hidden_size, output_size):
    """Parameter init mirroring the PyTorch module (shapes & reset_parameters)."""
    k1, k2, k3, k4, k5 = jax.random.split(key, 5)

    bound_in = 1.0 / jnp.sqrt(input_size)
    w_in = jax.random.uniform(k1, (hidden_size, input_size), jnp.float32,
                              -bound_in, bound_in)
    b_in = jax.random.uniform(k2, (hidden_size,), jnp.float32,
                              -bound_in, bound_in)

    bound_h = 1.0 / jnp.sqrt(hidden_size)
    w_h = 0.5 * jnp.eye(hidden_size, dtype=jnp.float32)   # nn.init.eye_ * 0.5
    b_h = jax.random.uniform(k3, (hidden_size,), jnp.float32,
                             -bound_h, bound_h)

    w_fc = jax.random.uniform(k4, (output_size, hidden_size), jnp.float32,
                              -bound_h, bound_h)
    b_fc = jax.random.uniform(k5, (output_size,), jnp.float32,
                              -bound_h, bound_h)

    return {"w_in": w_in, "b_in": b_in, "w_h": w_h, "b_h": b_h,
            "w_fc": w_fc, "b_fc": b_fc}


def ref_forward(x, noise, p, *, alpha, oneminusalpha):
    """Pure-JAX reference of the CTRNN + fc forward."""
    w_in_t, w_h_t, w_fc_t = p["w_in"].T, p["w_h"].T, p["w_fc"].T

    def step(h, inp):
        x_t, n_t = inp
        pre = x_t @ w_in_t + p["b_in"] + h @ w_h_t + p["b_h"] + n_t
        h_new = h * oneminusalpha + jnp.maximum(pre, 0.0) * alpha
        return h_new, h_new

    h0 = jnp.zeros((x.shape[1], p["w_in"].shape[0]), jnp.float32)
    _, acts = jax.lax.scan(step, h0, (x, noise))
    outs = acts @ w_fc_t + p["b_fc"]
    return outs, acts


if __name__ == "__main__":
    seq_len, batch, input_size, hidden_size, output_size = 8, 4, 16, 32, 8
    sigma_rec = 0.05
    alpha = 1.0                      # dt=None default path in RNNNet/CTRNN
    oneminusalpha = 1.0 - alpha
    sigma = float(jnp.sqrt(2.0 / alpha) * sigma_rec)

    key = jax.random.PRNGKey(0)
    k_x, k_noise, k_params = jax.random.split(key, 3)

    x = jax.random.normal(k_x, (seq_len, batch, input_size), jnp.float32)
    # Recurrent noise ~ N(0, sigma), one draw per step (matches torch.normal
    # inside CTRNN.recurrence), pre-sampled and passed in as data.
    noise = sigma * jax.random.normal(
        k_noise, (seq_len, batch, hidden_size), jnp.float32)

    params = init_params(k_params, input_size, hidden_size, output_size)

    fwd = jax.jit(functools.partial(
        rnn_net_forward, alpha=alpha, oneminusalpha=oneminusalpha))
    out, rnn_activity = fwd(x, noise, params)
    jax.block_until_ready((out, rnn_activity))

    ref_out, ref_act = ref_forward(
        x, noise, params, alpha=alpha, oneminusalpha=oneminusalpha)

    assert out.shape == (seq_len, batch, output_size)
    assert rnn_activity.shape == (seq_len, batch, hidden_size)
    assert jnp.allclose(rnn_activity, ref_act, atol=1e-4), float(
        jnp.max(jnp.abs(rnn_activity - ref_act)))
    assert jnp.allclose(out, ref_out, atol=1e-4), float(
        jnp.max(jnp.abs(out - ref_out)))

    print("KERNEL_OK")
</pallas_src>

<mosaic_0001>
module attributes {stable_mosaic.version = 11 : i64} {
  func.func @_fused_rnn_kernel(%arg0: i32, %arg1: i32, %arg2: memref<8x8x16xf32, #tpu.memory_space<vmem>>, %arg3: memref<8x8x128xf32, #tpu.memory_space<vmem>>, %arg4: memref<16x128xf32, #tpu.memory_space<vmem>>, %arg5: memref<128x128xf32, #tpu.memory_space<vmem>>, %arg6: memref<128x128xf32, #tpu.memory_space<vmem>>, %arg7: memref<1x128xf32, #tpu.memory_space<vmem>>, %arg8: memref<1x128xf32, #tpu.memory_space<vmem>>, %arg9: memref<8x8x128xf32, #tpu.memory_space<vmem>>, %arg10: memref<8x8x128xf32, #tpu.memory_space<vmem>>, %arg11: memref<8x128xf32, #tpu.memory_space<vmem>>) attributes {dimension_semantics = [#tpu.dimension_semantics<parallel>, #tpu.dimension_semantics<arbitrary>], iteration_bounds = array<i64: 1, 1>, scalar_prefetch = 0 : i64, scratch_operands = 1 : i64, tpu.core_type = #tpu.core_type<tc>, window_params = [{transform_indices = @transform_0, window_bounds = array<i64: 8, 8, 16>}, {transform_indices = @transform_1, window_bounds = array<i64: 8, 8, 128>}, {pipeline_mode = #tpu.pipeline_mode<synchronous>, transform_indices = @transform_2, window_bounds = array<i64: 16, 128>}, {pipeline_mode = #tpu.pipeline_mode<synchronous>, transform_indices = @transform_3, window_bounds = array<i64: 128, 128>}, {pipeline_mode = #tpu.pipeline_mode<synchronous>, transform_indices = @transform_4, window_bounds = array<i64: 128, 128>}, {pipeline_mode = #tpu.pipeline_mode<synchronous>, transform_indices = @transform_5, window_bounds = array<i64: 1, 128>}, {pipeline_mode = #tpu.pipeline_mode<synchronous>, transform_indices = @transform_6, window_bounds = array<i64: 1, 128>}, {transform_indices = @transform_7, window_bounds = array<i64: 8, 8, 128>}, {transform_indices = @transform_8, window_bounds = array<i64: 8, 8, 128>}]} {
    %c0_i32 = arith.constant 0 : i32
    %0 = arith.cmpi eq, %arg1, %c0_i32 : i32
    %1 = arith.extui %0 : i1 to i32
    %c0_i32_0 = arith.constant 0 : i32
    %2 = arith.cmpi ne, %1, %c0_i32_0 : i32
    scf.if %2 {
      %cst_93 = arith.constant 0.000000e+00 : f32
      %121 = vector.broadcast %cst_93 : f32 to vector<8x128xf32>
      %c0_94 = arith.constant 0 : index
      %c0_95 = arith.constant 0 : index
      %122 = vector.load %arg11[%c0_94, %c0_95] : memref<8x128xf32, #tpu.memory_space<vmem>>, vector<8x128xf32>
      tpu.vector_store %arg11[%c0_94, %c0_95], %121 {strides = array<i32>} : memref<8x128xf32, #tpu.memory_space<vmem>>, vector<8x128xf32>,
    } else {
    }
    %c0 = arith.constant 0 : index
    %c0_1 = arith.constant 0 : index
    %c0_2 = arith.constant 0 : index
    %3 = vector.load %arg2[%c0, %c0_1, %c0_2] : memref<8x8x16xf32, #tpu.memory_space<vmem>>, vector<8x8x16xf32>
    %4 = vector.shape_cast %3 : vector<8x8x16xf32> to vector<64x16xf32>
    %c0_3 = arith.constant 0 : index
    %c0_4 = arith.constant 0 : index
    %5 = vector.load %arg4[%c0_3, %c0_4] : memref<16x128xf32, #tpu.memory_space<vmem>>, vector<16x128xf32>
    %cst = arith.constant dense<0.000000e+00> : vector<64x128xf32>
    %6 = tpu.matmul %4, %5, %cst {dimension_numbers = #tpu.dot_dimension_numbers<[1], [0], [0], [1], [0, 0, 1, 1], [], []>} : vector<64x16xf32>, vector<16x128xf32>, vector<64x128xf32> -> vector<64x128xf32>
    %c0_5 = arith.constant 0 : index
    %c0_6 = arith.constant 0 : index
    %7 = vector.load %arg7[%c0_5, %c0_6] : memref<1x128xf32, #tpu.memory_space<vmem>>, vector<1x128xf32>
    %8 = vector.broadcast %7 : vector<1x128xf32> to vector<64x128xf32>
    %9 = arith.addf %6, %8 : vector<64x128xf32>
    %10 = vector.shape_cast %9 : vector<64x128xf32> to vector<8x8x128xf32>
    %c0_7 = arith.constant 0 : index
    %c0_8 = arith.constant 0 : index
    %c0_9 = arith.constant 0 : index
    %11 = vector.load %arg3[%c0_7, %c0_8, %c0_9] : memref<8x8x128xf32, #tpu.memory_space<vmem>>, vector<8x8x128xf32>
    %12 = arith.addf %10, %11 : vector<8x8x128xf32>
    %c0_10 = arith.constant 0 : index
    %c0_11 = arith.constant 0 : index
    %c0_12 = arith.constant 0 : index
    %13 = vector.load %arg10[%c0_10, %c0_11, %c0_12] : memref<8x8x128xf32, #tpu.memory_space<vmem>>, vector<8x8x128xf32>
    tpu.vector_store %arg10[%c0_10, %c0_11, %c0_12], %12 {strides = array<i32>} : memref<8x8x128xf32, #tpu.memory_space<vmem>>, vector<8x8x128xf32>,
    %c0_13 = arith.constant 0 : index
    %c0_14 = arith.constant 0 : index
    %14 = vector.load %arg11[%c0_13, %c0_14] : memref<8x128xf32, #tpu.memory_space<vmem>>, vector<8x128xf32>
    %c0_i32_15 = arith.constant 0 : i32
    %15 = arith.index_cast %c0_i32_15 : i32 to index
    %c0_16 = arith.constant 0 : index
    %c0_17 = arith.constant 0 : index
    %16 = vector.load %arg10[%15, %c0_16, %c0_17] : memref<8x8x128xf32, #tpu.memory_space<vmem>>, vector<1x8x128xf32>
    %17 = vector.shape_cast %16 : vector<1x8x128xf32> to vector<8x128xf32>
    %c0_18 = arith.constant 0 : index
    %c0_19 = arith.constant 0 : index
    %18 = vector.load %arg5[%c0_18, %c0_19] : memref<128x128xf32, #tpu.memory_space<vmem>>, vector<128x128xf32>
    %cst_20 = arith.constant dense<0.000000e+00> : vector<8x128xf32>
    %19 = tpu.matmul %14, %18, %cst_20 {dimension_numbers = #tpu.dot_dimension_numbers<[1], [0], [0], [1], [0, 0, 1, 1], [], []>} : vector<8x128xf32>, vector<128x128xf32>, vector<8x128xf32> -> vector<8x128xf32>
    %20 = arith.addf %17, %19 : vector<8x128xf32>
    %cst_21 = arith.constant 0.000000e+00 : f32
    %21 = vector.broadcast %cst_21 : f32 to vector<8x128xf32>
    %22 = arith.maximumf %20, %21 : vector<8x128xf32>
    %23 = arith.index_cast %c0_i32_15 : i32 to index
    %c0_22 = arith.constant 0 : index
    %c0_23 = arith.constant 0 : index
    %24 = vector.load %arg10[%23, %c0_22, %c0_23] : memref<8x8x128xf32, #tpu.memory_space<vmem>>, vector<1x8x128xf32>
    %25 = vector.shape_cast %24 : vector<1x8x128xf32> to vector<8x128xf32>
    %26 = vector.shape_cast %22 : vector<8x128xf32> to vector<1x8x128xf32>
    tpu.vector_store %arg10[%23, %c0_22, %c0_23], %26 {strides = array<i32>} : memref<8x8x128xf32, #tpu.memory_space<vmem>>, vector<1x8x128xf32>,
    %c1_i32 = arith.constant 1 : i32
    %27 = arith.index_cast %c1_i32 : i32 to index
    %c0_24 = arith.constant 0 : index
    %c0_25 = arith.constant 0 : index
    %28 = vector.load %arg10[%27, %c0_24, %c0_25] : memref<8x8x128xf32, #tpu.memory_space<vmem>>, vector<1x8x128xf32>
    %29 = vector.shape_cast %28 : vector<1x8x128xf32> to vector<8x128xf32>
    %c0_26 = arith.constant 0 : index
    %c0_27 = arith.constant 0 : index
    %30 = vector.load %arg5[%c0_26, %c0_27] : memref<128x128xf32, #tpu.memory_space<vmem>>, vector<128x128xf32>
    %cst_28 = arith.constant dense<0.000000e+00> : vector<8x128xf32>
    %31 = tpu.matmul %22, %30, %cst_28 {dimension_numbers = #tpu.dot_dimension_numbers<[1], [0], [0], [1], [0, 0, 1, 1], [], []>} : vector<8x128xf32>, vector<128x128xf32>, vector<8x128xf32> -> vector<8x128xf32>
    %32 = arith.addf %29, %31 : vector<8x128xf32>
    %cst_29 = arith.constant 0.000000e+00 : f32
    %33 = vector.broadcast %cst_29 : f32 to vector<8x128xf32>
    %34 = arith.maximumf %32, %33 : vector<8x128xf32>
    %35 = arith.index_cast %c1_i32 : i32 to index
    %c0_30 = arith.constant 0 : index
    %c0_31 = arith.constant 0 : index
    %36 = vector.load %arg10[%35, %c0_30, %c0_31] : memref<8x8x128xf32, #tpu.memory_space<vmem>>, vector<1x8x128xf32>
    %37 = vector.shape_cast %36 : vector<1x8x128xf32> to vector<8x128xf32>
    %38 = vector.shape_cast %34 : vector<8x128xf32> to vector<1x8x128xf32>
    tpu.vector_store %arg10[%35, %c0_30, %c0_31], %38 {strides = array<i32>} : memref<8x8x128xf32, #tpu.memory_space<vmem>>, vector<1x8x128xf32>,
    %c2_i32 = arith.constant 2 : i32
    %39 = arith.index_cast %c2_i32 : i32 to index
    %c0_32 = arith.constant 0 : index
    %c0_33 = arith.constant 0 : index
    %40 = vector.load %arg10[%39, %c0_32, %c0_33] : memref<8x8x128xf32, #tpu.memory_space<vmem>>, vector<1x8x128xf32>
    %41 = vector.shape_cast %40 : vector<1x8x128xf32> to vector<8x128xf32>
    %c0_34 = arith.constant 0 : index
    %c0_35 = arith.constant 0 : index
    %42 = vector.load %arg5[%c0_34, %c0_35] : memref<128x128xf32, #tpu.memory_space<vmem>>, vector<128x128xf32>
    %cst_36 = arith.constant dense<0.000000e+00> : vector<8x128xf32>
    %43 = tpu.matmul %34, %42, %cst_36 {dimension_numbers = #tpu.dot_dimension_numbers<[1], [0], [0], [1], [0, 0, 1, 1], [], []>} : vector<8x128xf32>, vector<128x128xf32>, vector<8x128xf32> -> vector<8x128xf32>
    %44 = arith.addf %41, %43 : vector<8x128xf32>
    %cst_37 = arith.constant 0.000000e+00 : f32
    %45 = vector.broadcast %cst_37 : f32 to vector<8x128xf32>
    %46 = arith.maximumf %44, %45 : vector<8x128xf32>
    %47 = arith.index_cast %c2_i32 : i32 to index
    %c0_38 = arith.constant 0 : index
    %c0_39 = arith.constant 0 : index
    %48 = vector.load %arg10[%47, %c0_38, %c0_39] : memref<8x8x128xf32, #tpu.memory_space<vmem>>, vector<1x8x128xf32>
    %49 = vector.shape_cast %48 : vector<1x8x128xf32> to vector<8x128xf32>
    %50 = vector.shape_cast %46 : vector<8x128xf32> to vector<1x8x128xf32>
    tpu.vector_store %arg10[%47, %c0_38, %c0_39], %50 {strides = array<i32>} : memref<8x8x128xf32, #tpu.memory_space<vmem>>, vector<1x8x128xf32>,
    %c3_i32 = arith.constant 3 : i32
    %51 = arith.index_cast %c3_i32 : i32 to index
    %c0_40 = arith.constant 0 : index
    %c0_41 = arith.constant 0 : index
    %52 = vector.load %arg10[%51, %c0_40, %c0_41] : memref<8x8x128xf32, #tpu.memory_space<vmem>>, vector<1x8x128xf32>
    %53 = vector.shape_cast %52 : vector<1x8x128xf32> to vector<8x128xf32>
    %c0_42 = arith.constant 0 : index
    %c0_43 = arith.constant 0 : index
    %54 = vector.load %arg5[%c0_42, %c0_43] : memref<128x128xf32, #tpu.memory_space<vmem>>, vector<128x128xf32>
    %cst_44 = arith.constant dense<0.000000e+00> : vector<8x128xf32>
    %55 = tpu.matmul %46, %54, %cst_44 {dimension_numbers = #tpu.dot_dimension_numbers<[1], [0], [0], [1], [0, 0, 1, 1], [], []>} : vector<8x128xf32>, vector<128x128xf32>, vector<8x128xf32> -> vector<8x128xf32>
    %56 = arith.addf %53, %55 : vector<8x128xf32>
    %cst_45 = arith.constant 0.000000e+00 : f32
    %57 = vector.broadcast %cst_45 : f32 to vector<8x128xf32>
    %58 = arith.maximumf %56, %57 : vector<8x128xf32>
    %59 = arith.index_cast %c3_i32 : i32 to index
    %c0_46 = arith.constant 0 : index
    %c0_47 = arith.constant 0 : index
    %60 = vector.load %arg10[%59, %c0_46, %c0_47] : memref<8x8x128xf32, #tpu.memory_space<vmem>>, vector<1x8x128xf32>
    %61 = vector.shape_cast %60 : vector<1x8x128xf32> to vector<8x128xf32>
    %62 = vector.shape_cast %58 : vector<8x128xf32> to vector<1x8x128xf32>
    tpu.vector_store %arg10[%59, %c0_46, %c0_47], %62 {strides = array<i32>} : memref<8x8x128xf32, #tpu.memory_space<vmem>>, vector<1x8x128xf32>,
    %c4_i32 = arith.constant 4 : i32
    %63 = arith.index_cast %c4_i32 : i32 to index
    %c0_48 = arith.constant 0 : index
    %c0_49 = arith.constant 0 : index
    %64 = vector.load %arg10[%63, %c0_48, %c0_49] : memref<8x8x128xf32, #tpu.memory_space<vmem>>, vector<1x8x128xf32>
    %65 = vector.shape_cast %64 : vector<1x8x128xf32> to vector<8x128xf32>
    %c0_50 = arith.constant 0 : index
    %c0_51 = arith.constant 0 : index
    %66 = vector.load %arg5[%c0_50, %c0_51] : memref<128x128xf32, #tpu.memory_space<vmem>>, vector<128x128xf32>
    %cst_52 = arith.constant dense<0.000000e+00> : vector<8x128xf32>
    %67 = tpu.matmul %58, %66, %cst_52 {dimension_numbers = #tpu.dot_dimension_numbers<[1], [0], [0], [1], [0, 0, 1, 1], [], []>} : vector<8x128xf32>, vector<128x128xf32>, vector<8x128xf32> -> vector<8x128xf32>
    %68 = arith.addf %65, %67 : vector<8x128xf32>
    %cst_53 = arith.constant 0.000000e+00 : f32
    %69 = vector.broadcast %cst_53 : f32 to vector<8x128xf32>
    %70 = arith.maximumf %68, %69 : vector<8x128xf32>
    %71 = arith.index_cast %c4_i32 : i32 to index
    %c0_54 = arith.constant 0 : index
    %c0_55 = arith.constant 0 : index
    %72 = vector.load %arg10[%71, %c0_54, %c0_55] : memref<8x8x128xf32, #tpu.memory_space<vmem>>, vector<1x8x128xf32>
    %73 = vector.shape_cast %72 : vector<1x8x128xf32> to vector<8x128xf32>
    %74 = vector.shape_cast %70 : vector<8x128xf32> to vector<1x8x128xf32>
    tpu.vector_store %arg10[%71, %c0_54, %c0_55], %74 {strides = array<i32>} : memref<8x8x128xf32, #tpu.memory_space<vmem>>, vector<1x8x128xf32>,
    %c5_i32 = arith.constant 5 : i32
    %75 = arith.index_cast %c5_i32 : i32 to index
    %c0_56 = arith.constant 0 : index
    %c0_57 = arith.constant 0 : index
    %76 = vector.load %arg10[%75, %c0_56, %c0_57] : memref<8x8x128xf32, #tpu.memory_space<vmem>>, vector<1x8x128xf32>
    %77 = vector.shape_cast %76 : vector<1x8x128xf32> to vector<8x128xf32>
    %c0_58 = arith.constant 0 : index
    %c0_59 = arith.constant 0 : index
    %78 = vector.load %arg5[%c0_58, %c0_59] : memref<128x128xf32, #tpu.memory_space<vmem>>, vector<128x128xf32>
    %cst_60 = arith.constant dense<0.000000e+00> : vector<8x128xf32>
    %79 = tpu.matmul %70, %78, %cst_60 {dimension_numbers = #tpu.dot_dimension_numbers<[1], [0], [0], [1], [0, 0, 1, 1], [], []>} : vector<8x128xf32>, vector<128x128xf32>, vector<8x128xf32> -> vector<8x128xf32>
    %80 = arith.addf %77, %79 : vector<8x128xf32>
    %cst_61 = arith.constant 0.000000e+00 : f32
    %81 = vector.broadcast %cst_61 : f32 to vector<8x128xf32>
    %82 = arith.maximumf %80, %81 : vector<8x128xf32>
    %83 = arith.index_cast %c5_i32 : i32 to index
    %c0_62 = arith.constant 0 : index
    %c0_63 = arith.constant 0 : index
    %84 = vector.load %arg10[%83, %c0_62, %c0_63] : memref<8x8x128xf32, #tpu.memory_space<vmem>>, vector<1x8x128xf32>
    %85 = vector.shape_cast %84 : vector<1x8x128xf32> to vector<8x128xf32>
    %86 = vector.shape_cast %82 : vector<8x128xf32> to vector<1x8x128xf32>
    tpu.vector_store %arg10[%83, %c0_62, %c0_63], %86 {strides = array<i32>} : memref<8x8x128xf32, #tpu.memory_space<vmem>>, vector<1x8x128xf32>,
    %c6_i32 = arith.constant 6 : i32
    %87 = arith.index_cast %c6_i32 : i32 to index
    %c0_64 = arith.constant 0 : index
    %c0_65 = arith.constant 0 : index
    %88 = vector.load %arg10[%87, %c0_64, %c0_65] : memref<8x8x128xf32, #tpu.memory_space<vmem>>, vector<1x8x128xf32>
    %89 = vector.shape_cast %88 : vector<1x8x128xf32> to vector<8x128xf32>
    %c0_66 = arith.constant 0 : index
    %c0_67 = arith.constant 0 : index
    %90 = vector.load %arg5[%c0_66, %c0_67] : memref<128x128xf32, #tpu.memory_space<vmem>>, vector<128x128xf32>
    %cst_68 = arith.constant dense<0.000000e+00> : vector<8x128xf32>
    %91 = tpu.matmul %82, %90, %cst_68 {dimension_numbers = #tpu.dot_dimension_numbers<[1], [0], [0], [1], [0, 0, 1, 1], [], []>} : vector<8x128xf32>, vector<128x128xf32>, vector<8x128xf32> -> vector<8x128xf32>
    %92 = arith.addf %89, %91 : vector<8x128xf32>
    %cst_69 = arith.constant 0.000000e+00 : f32
    %93 = vector.broadcast %cst_69 : f32 to vector<8x128xf32>
    %94 = arith.maximumf %92, %93 : vector<8x128xf32>
    %95 = arith.index_cast %c6_i32 : i32 to index
    %c0_70 = arith.constant 0 : index
    %c0_71 = arith.constant 0 : index
    %96 = vector.load %arg10[%95, %c0_70, %c0_71] : memref<8x8x128xf32, #tpu.memory_space<vmem>>, vector<1x8x128xf32>
    %97 = vector.shape_cast %96 : vector<1x8x128xf32> to vector<8x128xf32>
    %98 = vector.shape_cast %94 : vector<8x128xf32> to vector<1x8x128xf32>
    tpu.vector_store %arg10[%95, %c0_70, %c0_71], %98 {strides = array<i32>} : memref<8x8x128xf32, #tpu.memory_space<vmem>>, vector<1x8x128xf32>,
    %c7_i32 = arith.constant 7 : i32
    %99 = arith.index_cast %c7_i32 : i32 to index
    %c0_72 = arith.constant 0 : index
    %c0_73 = arith.constant 0 : index
    %100 = vector.load %arg10[%99, %c0_72, %c0_73] : memref<8x8x128xf32, #tpu.memory_space<vmem>>, vector<1x8x128xf32>
    %101 = vector.shape_cast %100 : vector<1x8x128xf32> to vector<8x128xf32>
    %c0_74 = arith.constant 0 : index
    %c0_75 = arith.constant 0 : index
    %102 = vector.load %arg5[%c0_74, %c0_75] : memref<128x128xf32, #tpu.memory_space<vmem>>, vector<128x128xf32>
    %cst_76 = arith.constant dense<0.000000e+00> : vector<8x128xf32>
    %103 = tpu.matmul %94, %102, %cst_76 {dimension_numbers = #tpu.dot_dimension_numbers<[1], [0], [0], [1], [0, 0, 1, 1], [], []>} : vector<8x128xf32>, vector<128x128xf32>, vector<8x128xf32> -> vector<8x128xf32>
    %104 = arith.addf %101, %103 : vector<8x128xf32>
    %cst_77 = arith.constant 0.000000e+00 : f32
    %105 = vector.broadcast %cst_77 : f32 to vector<8x128xf32>
    %106 = arith.maximumf %104, %105 : vector<8x128xf32>
    %107 = arith.index_cast %c7_i32 : i32 to index
    %c0_78 = arith.constant 0 : index
    %c0_79 = arith.constant 0 : index
    %108 = vector.load %arg10[%107, %c0_78, %c0_79] : memref<8x8x128xf32, #tpu.memory_space<vmem>>, vector<1x8x128xf32>
    %109 = vector.shape_cast %108 : vector<1x8x128xf32> to vector<8x128xf32>
    %110 = vector.shape_cast %106 : vector<8x128xf32> to vector<1x8x128xf32>
    tpu.vector_store %arg10[%107, %c0_78, %c0_79], %110 {strides = array<i32>} : memref<8x8x128xf32, #tpu.memory_space<vmem>>, vector<1x8x128xf32>,
    %c8_i32 = arith.constant 8 : i32
    %c0_80 = arith.constant 0 : index
    %c0_81 = arith.constant 0 : index
    %111 = vector.load %arg11[%c0_80, %c0_81] : memref<8x128xf32, #tpu.memory_space<vmem>>, vector<8x128xf32>
    tpu.vector_store %arg11[%c0_80, %c0_81], %106 {strides = array<i32>} : memref<8x128xf32, #tpu.memory_space<vmem>>, vector<8x128xf32>,
    %c0_82 = arith.constant 0 : index
    %c0_83 = arith.constant 0 : index
    %c0_84 = arith.constant 0 : index
    %112 = vector.load %arg10[%c0_82, %c0_83, %c0_84] : memref<8x8x128xf32, #tpu.memory_space<vmem>>, vector<8x8x128xf32>
    %113 = vector.shape_cast %112 : vector<8x8x128xf32> to vector<64x128xf32>
    %c0_85 = arith.constant 0 : index
    %c0_86 = arith.constant 0 : index
    %114 = vector.load %arg6[%c0_85, %c0_86] : memref<128x128xf32, #tpu.memory_space<vmem>>, vector<128x128xf32>
    %cst_87 = arith.constant dense<0.000000e+00> : vector<64x128xf32>
    %115 = tpu.matmul %113, %114, %cst_87 {dimension_numbers = #tpu.dot_dimension_numbers<[1], [0], [0], [1], [0, 0, 1, 1], [], []>} : vector<64x128xf32>, vector<128x128xf32>, vector<64x128xf32> -> vector<64x128xf32>
    %c0_88 = arith.constant 0 : index
    %c0_89 = arith.constant 0 : index
    %116 = vector.load %arg8[%c0_88, %c0_89] : memref<1x128xf32, #tpu.memory_space<vmem>>, vector<1x128xf32>
    %117 = vector.broadcast %116 : vector<1x128xf32> to vector<64x128xf32>
    %118 = arith.addf %115, %117 : vector<64x128xf32>
    %119 = vector.shape_cast %118 : vector<64x128xf32> to vector<8x8x128xf32>
    %c0_90 = arith.constant 0 : index
    %c0_91 = arith.constant 0 : index
    %c0_92 = arith.constant 0 : index
    %120 = vector.load %arg9[%c0_90, %c0_91, %c0_92] : memref<8x8x128xf32, #tpu.memory_space<vmem>>, vector<8x8x128xf32>
    tpu.vector_store %arg9[%c0_90, %c0_91, %c0_92], %119 {strides = array<i32>} : memref<8x8x128xf32, #tpu.memory_space<vmem>>, vector<8x8x128xf32>,
    return
  }
  func.func @transform_0(%arg0: i32, %arg1: i32) -> (i32, i32, i32) {
    %c0_i32 = arith.constant 0 : i32
    %c0_i32_0 = arith.constant 0 : i32
    return %arg1, %arg0, %c0_i32 : i32, i32, i32
  }
  func.func @transform_1(%arg0: i32, %arg1: i32) -> (i32, i32, i32) {
    %c0_i32 = arith.constant 0 : i32
    %c0_i32_0 = arith.constant 0 : i32
    return %arg1, %arg0, %c0_i32 : i32, i32, i32
  }
  func.func @transform_2(%arg0: i32, %arg1: i32) -> (i32, i32) {
    %c0_i32 = arith.constant 0 : i32
    %c0_i32_0 = arith.constant 0 : i32
    %c0_i32_1 = arith.constant 0 : i32
    return %c0_i32, %c0_i32_0 : i32, i32
  }
  func.func @transform_3(%arg0: i32, %arg1: i32) -> (i32, i32) {
    %c0_i32 = arith.constant 0 : i32
    %c0_i32_0 = arith.constant 0 : i32
    %c0_i32_1 = arith.constant 0 : i32
    return %c0_i32, %c0_i32_0 : i32, i32
  }
  func.func @transform_4(%arg0: i32, %arg1: i32) -> (i32, i32) {
    %c0_i32 = arith.constant 0 : i32
    %c0_i32_0 = arith.constant 0 : i32
    %c0_i32_1 = arith.constant 0 : i32
    return %c0_i32, %c0_i32_0 : i32, i32
  }
  func.func @transform_5(%arg0: i32, %arg1: i32) -> (i32, i32) {
    %c0_i32 = arith.constant 0 : i32
    %c0_i32_0 = arith.constant 0 : i32
    %c0_i32_1 = arith.constant 0 : i32
    return %c0_i32, %c0_i32_0 : i32, i32
  }
  func.func @transform_6(%arg0: i32, %arg1: i32) -> (i32, i32) {
    %c0_i32 = arith.constant 0 : i32
    %c0_i32_0 = arith.constant 0 : i32
    %c0_i32_1 = arith.constant 0 : i32
    return %c0_i32, %c0_i32_0 : i32, i32
  }
  func.func @transform_7(%arg0: i32, %arg1: i32) -> (i32, i32, i32) {
    %c0_i32 = arith.constant 0 : i32
    %c0_i32_0 = arith.constant 0 : i32
    return %arg1, %arg0, %c0_i32 : i32, i32, i32
  }
  func.func @transform_8(%arg0: i32, %arg1: i32) -> (i32, i32, i32) {
    %c0_i32 = arith.constant 0 : i32
    %c0_i32_0 = arith.constant 0 : i32
    return %arg1, %arg0, %c0_i32 : i32, i32, i32
  }
}

</mosaic_0001>

<bundles_post_ra>
// kernel: rnn_net_forward.1
= control target key start
LH: loop header
LB: loop body
LE: loop exit
PB: predicated region body
PF: predicated region fallthrough
CT: control target
= control target key end

     0   :  { %vm47_vm0 = vcmask 130048   ;;  %v578_v23 = vmov 0.0   ;;  %s1022_s3 = inlined_call_operand.vmem [shape: f32[128,128], index: 3, kind: input, shape index: {}]   ;;  %s1023_s2 = inlined_call_operand.vmem [shape: f32[16,128], index: 2, kind: input, shape index: {}]   ;;  %s1024_s0 = inlined_call_operand.vmem [shape: f32[8,8,16], index: 0, kind: input, shape index: {}]   ;;  %s1025_s4 = inlined_call_operand.vmem [shape: f32[128,128], index: 4, kind: input, shape index: {}]   ;;  %s1026_s5 = inlined_call_operand.vmem [shape: f32[1,128], index: 5, kind: input, shape index: {}]   ;;  %s1027_s1 = inlined_call_operand.vmem [shape: f32[8,8,128], index: 1, kind: input, shape index: {}]   ;;  %s1028_s8 = inlined_call_operand.vmem [shape: f32[8,8,128], index: 8, kind: output, shape index: {1}]   ;;  %s1029_s6 = inlined_call_operand.vmem [shape: f32[1,128], index: 6, kind: input, shape index: {}]   ;;  %s1030_s7 = inlined_call_operand.vmem [shape: f32[8,8,128], index: 7, kind: output, shape index: {0}]  }
   0x1   :  { %v627_v0 = vld [vmem:[%s1022_s3 + $0x78] sm:$0xff]  ;;  %v632_v1 = vld [vmem:[%s1022_s3 + $0x70] sm:$0xff]  ;;  %v639_v2 = vld [vmem:[%s1022_s3 + $0x68] sm:$0xff] }
   0x2   :  { %155 = vmatpush.msra.mxu1 %v627_v0  ;;  %196 = vmatpush.msra.mxu3 %v627_v0  ;;  %v42_v3 = vld [vmem:[%s1023_s2 + $0x8] sm:$0xff]  ;;  %v41_v4 = vld [vmem:[%s1023_s2] sm:$0xff]  ;;  %v661_v7 = vld [vmem:[%s1022_s3 + $0x58] sm:$0xff] }
   0x3   :  { %86 = vmatpush.msra.mxu0 %v42_v3  ;;  %v651_v5 = vld [vmem:[%s1022_s3 + $0x60] sm:$0xff]  ;;  %573 = vmatpush.msra.mxu2 %v42_v3  ;;  %v489_v9 = vld [vmem:[%s1025_s4 + $0x78] sm:$0xff]  ;;  %v675_v10 = vld [vmem:[%s1022_s3 + $0x50] sm:$0xff] }
   0x4   :  { %156 = vmatpush.msra.mxu1 %v632_v1  ;;  %v33_v6 = vld [vmem:[%s1024_s0] sm:$0xff]  ;;  %197 = vmatpush.msra.mxu3 %v632_v1  ;;  %v488_v11 = vld [vmem:[%s1025_s4 + $0x70] sm:$0xff]  ;;  %v686_v12 = vld [vmem:[%s1022_s3 + $0x48] sm:$0xff] }
   0x5   :  { %87 = vmatpush.msra.mxu0 %v41_v4  ;;  %v37_v8 = vld [vmem:[%s1024_s0 + $0x20] sm:$0xff]  ;;  %574 = vmatpush.msra.mxu2 %v41_v4  ;;  %v487_v13 = vld [vmem:[%s1025_s4 + $0x68] sm:$0xff]  ;;  %v705_v15 = vld [vmem:[%s1022_s3 + $0x38] sm:$0xff] }
   0x6   :  { %157 = vmatpush.msra.mxu1 %v639_v2  ;;  %551 = vmatmul.msk.f32.vlgmr.msra.gmra.mxu0 %vm47_vm0, %v33_v6  ;;  %v697_v14 = vld [vmem:[%s1022_s3 + $0x40] sm:$0xff]  ;;  %v713_v16 = vld [vmem:[%s1022_s3 + $0x30] sm:$0xff]  ;;  %v721_v17 = vld [vmem:[%s1022_s3 + $0x28] sm:$0xff] }
   0x7   :  { %198 = vmatpush.msra.mxu3 %v639_v2  ;;  %555 = vmatmul.msk.f32.vlgmr.msra.gmra.mxu2 %vm47_vm0, %v37_v8  ;;  %v729_v18 = vld [vmem:[%s1022_s3 + $0x20] sm:$0xff]  ;;  %v737_v19 = vld [vmem:[%s1022_s3 + $0x18] sm:$0xff]  ;;  %v745_v20 = vld [vmem:[%s1022_s3 + $0x10] sm:$0xff] }
   0x8   :  { %158 = vmatpush.msra.mxu1 %v651_v5  ;;  %494 = vmatpush.msrb.mxu2 %v489_v9  ;;  %v753_v21 = vld [vmem:[%s1022_s3 + $0x8] sm:$0xff]  ;;  %v761_v22 = vld [vmem:[%s1022_s3] sm:$0xff]  ;;  %v485_v26 = vld [vmem:[%s1025_s4 + $0x58] sm:$0xff] }
   0x9   :  { %199 = vmatpush.msra.mxu3 %v651_v5  ;;  %319 = vmatpush.msrb.mxu0 %v627_v0  ;;  %v486_v24 = vld [vmem:[%s1025_s4 + $0x60] sm:$0xff]  ;;  %v38_v25 = vld [vmem:[%s1024_s0 + $0x28] sm:$0xff]  ;;  %v484_v27 = vld [vmem:[%s1025_s4 + $0x50] sm:$0xff] }
   0xa   :  { %159 = vmatpush.msra.mxu1 %v661_v7  ;;  %495 = vmatpush.msrb.mxu2 %v488_v11  ;;  %v34_v28 = vld [vmem:[%s1024_s0 + $0x8] sm:$0xff]  ;;  %v482_v30 = vld [vmem:[%s1025_s4 + $0x40] sm:$0xff]  ;;  %v39_v31 = vld [vmem:[%s1024_s0 + $0x30] sm:$0xff] }
   0xb   :  { %200 = vmatpush.msra.mxu3 %v661_v7  ;;  %320 = vmatpush.msrb.mxu0 %v632_v1  ;;  %v483_v29 = vld [vmem:[%s1025_s4 + $0x48] sm:$0xff]  ;;  %v481_v32 = vld [vmem:[%s1025_s4 + $0x38] sm:$0xff]  ;;  %v480_v33 = vld [vmem:[%s1025_s4 + $0x30] sm:$0xff] }
   0xc   :  { %160 = vmatpush.msra.mxu1 %v675_v10  ;;  %496 = vmatpush.msrb.mxu2 %v487_v13  ;;  %v479_v34 = vld [vmem:[%s1025_s4 + $0x28] sm:$0xff]  ;;  %v478_v35 = vld [vmem:[%s1025_s4 + $0x20] sm:$0xff]  ;;  %v40_v36 = vld [vmem:[%s1024_s0 + $0x38] sm:$0xff] }
   0xd   :  { %201 = vmatpush.msra.mxu3 %v675_v10  ;;  %321 = vmatpush.msrb.mxu0 %v639_v2  ;;  %v477_v37 = vld [vmem:[%s1025_s4 + $0x18] sm:$0xff]  ;;  %v476_v38 = vld [vmem:[%s1025_s4 + $0x10] sm:$0xff]  ;;  %v475_v39 = vld [vmem:[%s1025_s4 + $0x8] sm:$0xff] }
   0xe   :  { %161 = vmatpush.msra.mxu1 %v686_v12  ;;  %497 = vmatpush.msrb.mxu2 %v486_v24  ;;  %v474_v40 = vld [vmem:[%s1025_s4] sm:$0xff]  ;;  %v35_v49 = vld [vmem:[%s1024_s0 + $0x10] sm:$0xff]  ;;  %v114_v56 = vld [vmem:[%s1027_s1 + $0x8] sm:$0xff] }
   0xf   :  { %202 = vmatpush.msra.mxu3 %v686_v12  ;;  %322 = vmatpush.msrb.mxu0 %v651_v5  ;;  %v897_v41 = vld [vmem:[%s1026_s5] ss:$0 sm:$0xff]  ;;  %v115_v3 = vld [vmem:[%s1027_s1 + $0x10] sm:$0xff] }
  0x10   :  { %162 = vmatpush.msra.mxu1 %v697_v14  ;;  %556 = vmatmul.msk.f32.gmra.mxu2 %vm47_vm0, %v38_v25  ;;  %v113_v44 = vld [vmem:[%s1027_s1] sm:$0xff] }
  0x11   :  { %203 = vmatpush.msra.mxu3 %v697_v14  ;;  %323 = vmatpush.msrb.mxu0 %v661_v7  ;;  %v937_v58 = vld [vmem:[%s1029_s6] ss:$0 sm:$0xff] }
  0x12   :  { %163 = vmatpush.msra.mxu1 %v705_v15  ;;  %498 = vmatpush.msrb.mxu2 %v485_v26 }
  0x13   :  { %204 = vmatpush.msra.mxu3 %v705_v15  ;;  %324 = vmatpush.msrb.mxu0 %v675_v10 }
  0x14   :  { %164 = vmatpush.msra.mxu1 %v713_v16  ;;  %552 = vmatmul.msk.f32.gmra.mxu0 %vm47_vm0, %v34_v28  ;;  %v118_v28 = vld [vmem:[%s1027_s1 + $0x28] sm:$0xff] }
  0x15   :  { %205 = vmatpush.msra.mxu3 %v713_v16  ;;  %325 = vmatpush.msrb.mxu0 %v686_v12 }
  0x16   :  { %165 = vmatpush.msra.mxu1 %v721_v17  ;;  %499 = vmatpush.msrb.mxu2 %v484_v27 }
  0x17   :  { %206 = vmatpush.msra.mxu3 %v721_v17  ;;  %326 = vmatpush.msrb.mxu0 %v697_v14 }
  0x18   :  { %166 = vmatpush.msra.mxu1 %v729_v18  ;;  %500 = vmatpush.msrb.mxu2 %v483_v29 }
  0x19   :  { %207 = vmatpush.msra.mxu3 %v729_v18  ;;  %327 = vmatpush.msrb.mxu0 %v705_v15 }
  0x1a   :  { %167 = vmatpush.msra.mxu1 %v737_v19  ;;  %501 = vmatpush.msrb.mxu2 %v482_v30 }
  0x1b   :  { %208 = vmatpush.msra.mxu3 %v737_v19  ;;  %328 = vmatpush.msrb.mxu0 %v713_v16 }
  0x1c   :  { %168 = vmatpush.msra.mxu1 %v745_v20  ;;  %557 = vmatmul.msk.f32.gmra.mxu2 %vm47_vm0, %v39_v31 }
  0x1d   :  { %209 = vmatpush.msra.mxu3 %v745_v20  ;;  %329 = vmatpush.msrb.mxu0 %v721_v17 }
  0x1e   :  { %169 = vmatpush.msra.mxu1 %v753_v21  ;;  %502 = vmatpush.msrb.mxu2 %v481_v32 }
  0x1f   :  { %210 = vmatpush.msra.mxu3 %v753_v21  ;;  %330 = vmatpush.msrb.mxu0 %v729_v18 }
  0x20   :  { %170 = vmatpush.msra.mxu1 %v761_v22  ;;  %503 = vmatpush.msrb.mxu2 %v480_v33 }
  0x21   :  { %171 = vmatmul.f32.vlgmr.msra.gmra.mxu1 %v578_v23  ;;  %211 = vmatpush.msra.mxu3 %v761_v22 }
  0x22   :  { %278 = vmatpush.msrb.mxu1 %v627_v0  ;;  %331 = vmatpush.msrb.mxu0 %v737_v19 }
  0x23   :  { %237 = vmatpush.msrb.mxu3 %v627_v0  ;;  %504 = vmatpush.msrb.mxu2 %v479_v34 }
  0x24   :  { %279 = vmatpush.msrb.mxu1 %v632_v1  ;;  %332 = vmatpush.msrb.mxu0 %v745_v20 }
  0x25   :  { %238 = vmatpush.msrb.mxu3 %v632_v1  ;;  %505 = vmatpush.msrb.mxu2 %v478_v35 }
  0x26   :  { %280 = vmatpush.msrb.mxu1 %v639_v2  ;;  %333 = vmatpush.msrb.mxu0 %v753_v21 }
  0x27   :  { %239 = vmatpush.msrb.mxu3 %v639_v2  ;;  %558 = vmatmul.msk.f32.gmra.mxu2 %vm47_vm0, %v40_v36  ;;  %v119_v36 = vld [vmem:[%s1027_s1 + $0x30] sm:$0xff] }
  0x28   :  { %281 = vmatpush.msrb.mxu1 %v651_v5  ;;  %334 = vmatpush.msrb.mxu0 %v761_v22 }
  0x29   :  { %240 = vmatpush.msrb.mxu3 %v651_v5  ;;  %506 = vmatpush.msrb.mxu2 %v477_v37 }
  0x2a   :  { %282 = vmatpush.msrb.mxu1 %v661_v7  ;;  %401 = vmatpush.msra.mxu0 %v627_v0 }
  0x2b   :  { %241 = vmatpush.msrb.mxu3 %v661_v7  ;;  %507 = vmatpush.msrb.mxu2 %v476_v38 }
  0x2c   :  { %283 = vmatpush.msrb.mxu1 %v675_v10  ;;  %402 = vmatpush.msra.mxu0 %v632_v1 }
  0x2d   :  { %242 = vmatpush.msrb.mxu3 %v675_v10  ;;  %508 = vmatpush.msrb.mxu2 %v475_v39 }
  0x2e   :  { %284 = vmatpush.msrb.mxu1 %v686_v12  ;;  %403 = vmatpush.msra.mxu0 %v639_v2 }
  0x2f   :  { %243 = vmatpush.msrb.mxu3 %v686_v12  ;;  %509 = vmatpush.msrb.mxu2 %v474_v40 }
  0x30   :  { %285 = vmatpush.msrb.mxu1 %v697_v14  ;;  %404 = vmatpush.msra.mxu0 %v651_v5 }
  0x31   :  { %244 = vmatpush.msrb.mxu3 %v697_v14  ;;  %553 = vmatmul.msk.f32.gmra.mxu0 %vm47_vm0, %v35_v49 }
  0x32   :  { %286 = vmatpush.msrb.mxu1 %v705_v15  ;;  %405 = vmatpush.msra.mxu0 %v661_v7 }
  0x33   :  { %245 = vmatpush.msrb.mxu3 %v705_v15 }
  0x34   :  { %287 = vmatpush.msrb.mxu1 %v713_v16  ;;  %406 = vmatpush.msra.mxu0 %v675_v10 }
  0x35   :  { %246 = vmatpush.msrb.mxu3 %v713_v16 }
  0x36   :  { %288 = vmatpush.msrb.mxu1 %v721_v17  ;;  %407 = vmatpush.msra.mxu0 %v686_v12 }
  0x37   :  { %247 = vmatpush.msrb.mxu3 %v721_v17 }
  0x38   :  { %289 = vmatpush.msrb.mxu1 %v729_v18  ;;  %408 = vmatpush.msra.mxu0 %v697_v14 }
  0x39   :  { %248 = vmatpush.msrb.mxu3 %v729_v18 }
  0x3a   :  { %290 = vmatpush.msrb.mxu1 %v737_v19  ;;  %409 = vmatpush.msra.mxu0 %v705_v15 }
  0x3b   :  { %249 = vmatpush.msrb.mxu3 %v737_v19 }
  0x3c   :  { %291 = vmatpush.msrb.mxu1 %v745_v20  ;;  %410 = vmatpush.msra.mxu0 %v713_v16 }
  0x3d   :  { %250 = vmatpush.msrb.mxu3 %v745_v20 }
  0x3e   :  { %292 = vmatpush.msrb.mxu1 %v753_v21  ;;  %411 = vmatpush.msra.mxu0 %v721_v17 }
  0x3f   :  { %251 = vmatpush.msrb.mxu3 %v753_v21 }
  0x40   :  { %293 = vmatpush.msrb.mxu1 %v761_v22  ;;  %412 = vmatpush.msra.mxu0 %v729_v18 }
  0x41   :  { %252 = vmatpush.msrb.mxu3 %v761_v22 }
  0x42   :  { %442 = vmatpush.msra.mxu1 %v627_v0  ;;  %413 = vmatpush.msra.mxu0 %v737_v19 }
  0x44   :  { %443 = vmatpush.msra.mxu1 %v632_v1  ;;  %414 = vmatpush.msra.mxu0 %v745_v20 }
  0x46   :  { %444 = vmatpush.msra.mxu1 %v639_v2  ;;  %415 = vmatpush.msra.mxu0 %v753_v21 }
  0x48   :  { %445 = vmatpush.msra.mxu1 %v651_v5  ;;  %416 = vmatpush.msra.mxu0 %v761_v22 }
  0x4a   :  { %446 = vmatpush.msra.mxu1 %v661_v7 }
  0x4c   :  { %447 = vmatpush.msra.mxu1 %v675_v10 }
  0x4e   :  { %448 = vmatpush.msra.mxu1 %v686_v12 }
  0x50   :  { %449 = vmatpush.msra.mxu1 %v697_v14 }
  0x52   :  { %450 = vmatpush.msra.mxu1 %v705_v15 }
  0x54   :  { %451 = vmatpush.msra.mxu1 %v713_v16 }
  0x56   :  { %452 = vmatpush.msra.mxu1 %v721_v17 }
  0x58   :  { %453 = vmatpush.msra.mxu1 %v729_v18 }
  0x5a   :  { %454 = vmatpush.msra.mxu1 %v737_v19 }
  0x5c   :  { %455 = vmatpush.msra.mxu1 %v745_v20 }
  0x5e   :  { %456 = vmatpush.msra.mxu1 %v753_v21 }
  0x60   :  { %457 = vmatpush.msra.mxu1 %v761_v22 }
  0x83   :  { %v89_v42 = vpop.f32.mrf.mxu0 }
  0x84   :  { %v90_v43 = vadd.f32 %v897_v41, %v89_v42 }
  0x86   :  { %v121_v45 = vadd.f32 %v113_v44, %v90_v43 }
  0x8a   :  { %v101_v50 = vpop.f32.mrf.mxu2 }
  0x91   :  { %v92_v53 = vpop.f32.mrf.mxu0 }
  0x92   :  { %v93_v55 = vadd.f32 %v897_v41, %v92_v53 }
  0x93   :  { %v104_v51 = vpop.f32.mrf.mxu2 }
  0x94   :  { %v122_v57 = vadd.f32 %v114_v56, %v93_v55  ;;  %v105_v27 = vadd.f32 %v897_v41, %v104_v51 }
  0x96   :  { %v126_v29 = vadd.f32 %v118_v28, %v105_v27 }
  0x9e   :  { %v172_v46 = vpop.f32.mrf.mxu1 }
  0x9f   :  { %v175_v47 = vadd.f32 %v172_v46, %v121_v45  ;;  %v926_v52 = vpop.f32.mrf.mxu2  ;;  %v120_v45 = vld [vmem:[%s1027_s1 + $0x38] sm:$0xff] }
  0xa0   :  { %v108_v35 = vadd.f32 %v897_v41, %v926_v52 }
  0xa1   :  { %v176_v48 = vmax.f32 %v175_v47, 0.0 }
  0xa2   :  { %v127_v37 = vadd.f32 %v119_v36, %v108_v35 }
  0xa3   :  { %177 = vst [vmem:[%s1028_s8] sm:$0xff] %v176_v48  ;;  %212 = vmatmul.f32.vlgmr.msra.gmra.mxu3 %v176_v48  ;;  %510 = vmatmul.f32.vlgmr.msrb.gmra.mxu2 %v176_v48 }
  0xa4   :  { %360 = vmatpush.msra.mxu3 %v627_v0  ;;  %v36_v0 = vld [vmem:[%s1024_s0 + $0x18] sm:$0xff] }
  0xa5   :  { %554 = vmatmul.msk.f32.gmra.mxu0 %vm47_vm0, %v36_v0 }
  0xa6   :  { %361 = vmatpush.msra.mxu3 %v632_v1 }
  0xa8   :  { %362 = vmatpush.msra.mxu3 %v639_v2 }
  0xaa   :  { %363 = vmatpush.msra.mxu3 %v651_v5  ;;  %v928_v54 = vpop.f32.mrf.mxu2 }
  0xab   :  { %v111_v44 = vadd.f32 %v897_v41, %v928_v54 }
  0xac   :  { %364 = vmatpush.msra.mxu3 %v661_v7 }
  0xad   :  { %v128_v46 = vadd.f32 %v120_v45, %v111_v44 }
  0xae   :  { %365 = vmatpush.msra.mxu3 %v675_v10  ;;  %v95_v1 = vpop.f32.mrf.mxu0 }
  0xaf   :  { %v96_v2 = vadd.f32 %v897_v41, %v95_v1 }
  0xb0   :  { %366 = vmatpush.msra.mxu3 %v686_v12  ;;  %v116_v12 = vld [vmem:[%s1027_s1 + $0x18] sm:$0xff] }
  0xb1   :  { %v123_v4 = vadd.f32 %v115_v3, %v96_v2 }
  0xb2   :  { %367 = vmatpush.msra.mxu3 %v697_v14 }
  0xb4   :  { %368 = vmatpush.msra.mxu3 %v705_v15 }
  0xb6   :  { %369 = vmatpush.msra.mxu3 %v713_v16 }
  0xb8   :  { %370 = vmatpush.msra.mxu3 %v721_v17 }
  0xba   :  { %371 = vmatpush.msra.mxu3 %v729_v18 }
  0xbc   :  { %372 = vmatpush.msra.mxu3 %v737_v19  ;;  %v102_v19 = vadd.f32 %v897_v41, %v101_v50 }
  0xbe   :  { %373 = vmatpush.msra.mxu3 %v745_v20  ;;  %v117_v20 = vld [vmem:[%s1027_s1 + $0x20] sm:$0xff] }
  0xc0   :  { %374 = vmatpush.msra.mxu3 %v753_v21  ;;  %v125_v21 = vadd.f32 %v117_v20, %v102_v19 }
  0xc2   :  { %375 = vmatpush.msra.mxu3 %v761_v22 }
 0x122   :  { %v98_v10 = vpop.f32.mrf.mxu0 }
 0x123   :  { %v99_v11 = vadd.f32 %v897_v41, %v98_v10 }
 0x125   :  { %v124_v13 = vadd.f32 %v116_v12, %v99_v11 }
 0x126   :  { %v213_v59 = vpop.f32.mrf.mxu3  ;;  %v511_v60 = vpop.f32.mrf.mxu2 }
 0x127   :  { %v216_v61 = vadd.f32 %v213_v59, %v122_v57  ;;  %v512_v62 = vadd.f32 %v937_v58, %v511_v60 }
 0x129   :  { %v217_v63 = vmax.f32 %v216_v61, 0.0  ;;  %535 = vst [vmem:[%s1030_s7] sm:$0xff] %v512_v62 }
 0x12b   :  { %560 = vst [vmem:[%s1028_s8 + $0x8] sm:$0xff] %v217_v63  ;;  %253 = vmatmul.f32.vlgmr.msrb.gmra.mxu3 %v217_v63  ;;  %513 = vmatmul.f32.gmra.mxu2 %v217_v63 }
 0x1ae   :  { %v254_v5 = vpop.f32.mrf.mxu3  ;;  %v514_v6 = vpop.f32.mrf.mxu2 }
 0x1af   :  { %v257_v7 = vadd.f32 %v254_v5, %v123_v4  ;;  %v515_v8 = vadd.f32 %v937_v58, %v514_v6 }
 0x1b1   :  { %v258_v9 = vmax.f32 %v257_v7, 0.0  ;;  %536 = vst [vmem:[%s1030_s7 + $0x8] sm:$0xff] %v515_v8 }
 0x1b3   :  { %562 = vst [vmem:[%s1028_s8 + $0x10] sm:$0xff] %v258_v9  ;;  %294 = vmatmul.f32.vlgmr.msrb.gmra.mxu1 %v258_v9  ;;  %516 = vmatmul.f32.gmra.mxu2 %v258_v9 }
 0x230   :  { %v295_v14 = vpop.f32.mrf.mxu1 }
 0x231   :  { %v298_v15 = vadd.f32 %v295_v14, %v124_v13 }
 0x233   :  { %v299_v16 = vmax.f32 %v298_v15, 0.0 }
 0x235   :  { %564 = vst [vmem:[%s1028_s8 + $0x18] sm:$0xff] %v299_v16  ;;  %335 = vmatmul.f32.vlgmr.msrb.gmra.mxu0 %v299_v16  ;;  %519 = vmatmul.f32.gmra.mxu2 %v299_v16 }
 0x236   :  { %v517_v17 = vpop.f32.mrf.mxu2 }
 0x237   :  { %v518_v18 = vadd.f32 %v937_v58, %v517_v17 }
 0x239   :  { %537 = vst [vmem:[%s1030_s7 + $0x10] sm:$0xff] %v518_v18 }
 0x2b2   :  { %v336_v22 = vpop.f32.mrf.mxu0 }
 0x2b3   :  { %v339_v23 = vadd.f32 %v336_v22, %v125_v21 }
 0x2b5   :  { %v340_v24 = vmax.f32 %v339_v23, 0.0 }
 0x2b7   :  { %566 = vst [vmem:[%s1028_s8 + $0x20] sm:$0xff] %v340_v24  ;;  %376 = vmatmul.f32.vlgmr.msra.gmra.mxu3 %v340_v24  ;;  %522 = vmatmul.f32.gmra.mxu2 %v340_v24 }
 0x2b8   :  { %v520_v25 = vpop.f32.mrf.mxu2 }
 0x2b9   :  { %v521_v26 = vadd.f32 %v937_v58, %v520_v25 }
 0x2bb   :  { %538 = vst [vmem:[%s1030_s7 + $0x18] sm:$0xff] %v521_v26 }
 0x33a   :  { %v377_v30 = vpop.f32.mrf.mxu3  ;;  %v523_v31 = vpop.f32.mrf.mxu2 }
 0x33b   :  { %v380_v32 = vadd.f32 %v377_v30, %v126_v29  ;;  %v524_v33 = vadd.f32 %v937_v58, %v523_v31 }
 0x33d   :  { %v381_v34 = vmax.f32 %v380_v32, 0.0  ;;  %539 = vst [vmem:[%s1030_s7 + $0x20] sm:$0xff] %v524_v33 }
 0x33f   :  { %568 = vst [vmem:[%s1028_s8 + $0x28] sm:$0xff] %v381_v34  ;;  %417 = vmatmul.f32.vlgmr.msra.gmra.mxu0 %v381_v34  ;;  %525 = vmatmul.f32.gmra.mxu2 %v381_v34 }
 0x3bc   :  { %v418_v38 = vpop.f32.mrf.mxu0 }
 0x3bd   :  { %v421_v39 = vadd.f32 %v418_v38, %v127_v37 }
 0x3bf   :  { %v422_v40 = vmax.f32 %v421_v39, 0.0 }
 0x3c1   :  { %570 = vst [vmem:[%s1028_s8 + $0x30] sm:$0xff] %v422_v40  ;;  %458 = vmatmul.f32.vlgmr.msra.gmra.mxu1 %v422_v40  ;;  %528 = vmatmul.f32.gmra.mxu2 %v422_v40 }
 0x3c2   :  { %v526_v42 = vpop.f32.mrf.mxu2 }
 0x3c3   :  { %v527_v43 = vadd.f32 %v937_v58, %v526_v42 }
 0x3c5   :  { %540 = vst [vmem:[%s1030_s7 + $0x28] sm:$0xff] %v527_v43 }
 0x43e   :  { %v459_v47 = vpop.f32.mrf.mxu1 }
 0x43f   :  { %v462_v48 = vadd.f32 %v459_v47, %v128_v46 }
 0x441   :  { %v463_v49 = vmax.f32 %v462_v48, 0.0 }
 0x443   :  { %572 = vst [vmem:[%s1028_s8 + $0x38] sm:$0xff] %v463_v49  ;;  %531 = vmatmul.f32.gmra.mxu2 %v463_v49 }
 0x444   :  { %v529_v50 = vpop.f32.mrf.mxu2 }
 0x445   :  { %v530_v51 = vadd.f32 %v937_v58, %v529_v50 }
 0x447   :  { %541 = vst [vmem:[%s1030_s7 + $0x30] sm:$0xff] %v530_v51 }
 0x4c6   :  { %v532_v41 = vpop.f32.mrf.mxu2 }
 0x4c7   :  { %v533_v52 = vadd.f32 %v937_v58, %v532_v41 }
 0x4c9   :  { %542 = vst [vmem:[%s1030_s7 + $0x38] sm:$0xff] %v533_v52 }

</bundles_post_ra>
